<compile_context>
chip_gen: v7x
topology: tpu7x:2x2x1
jax: 0.10.0
libtpu: 0.0.40
codegen_flags: <defaults>
</compile_context>

<pallas_src>
import functools

import jax
import jax.numpy as jnp
from jax.experimental import pallas as pl
from jax.experimental.pallas import tpu as pltpu

BN_EPS = 1e-5
LANE = 128


def _round_up(n, m):
    return ((n + m - 1) // m) * m


def mlp_kernel(x_ref, w1_ref, gamma_ref, beta_ref, w2_ref, b2_ref, o_ref):
    # ---- layer1: Linear (bias omitted: exactly cancelled by train-mode BN) ----
    # bf16 operands on the MXU, f32 accumulation. Hp is lane-dense (128).
    h = jnp.dot(x_ref[...].astype(jnp.bfloat16), w1_ref[...],
                preferred_element_type=jnp.float32)            # (B, Hp) f32

    # ---- layer1: BatchNorm1d, training mode (batch mean, biased variance) ----
    # Stats in f32; normalization folded into a single FMA over the (B, Hp) tile.
    # Padded columns: h == 0 -> mean = var = 0, gamma_pad = 0 -> scale = 0.
    mean = jnp.mean(h, axis=0, keepdims=True)                  # (1, Hp)
    centered = h - mean                                        # (B, Hp)
    var = jnp.mean(centered * centered, axis=0, keepdims=True)  # (1, Hp)
    scale = gamma_ref[...] * jax.lax.rsqrt(var + BN_EPS)        # rsqrt -> EUP
    h_bn = centered * scale + beta_ref[...]                     # one FMA over (B, Hp)

    # ---- layer1: ReLU (kept in f32; v5e has no bf16 VALU) ----
    h_relu = jnp.maximum(h_bn, 0.0)

    # ---- layer2: Linear (bf16 operands, f32 accumulate, lane-dense padded N) ----
    o_ref[...] = jnp.dot(h_relu.astype(jnp.bfloat16), w2_ref[...],
                         preferred_element_type=jnp.float32) + b2_ref[...]


def prepare_params(w1, b1, gamma, beta, w2, b2):
    """One-time parameter preparation (hoisted off the hot path).

    Pads the hidden and output feature dims to the 128-lane width, casts the
    matmul operands to bf16, and reshapes 1-D params to (1, N).  b1 is dropped:
    with BatchNorm1d in TRAINING mode right after the first Linear, the bias is
    exactly cancelled by the batch-mean subtraction.
    # TODO(synk): reinstate b1 and use running stats if eval-mode BN is needed.
    """
    del b1  # mathematically redundant in train mode (see docstring)

    in_dim, n_hidden = w1.shape
    out_dim = w2.shape[1]
    h_pad = _round_up(max(n_hidden, LANE), LANE)
    o_pad = _round_up(max(out_dim, LANE), LANE)

    w1_bf = jnp.pad(w1, ((0, 0), (0, h_pad - n_hidden))).astype(jnp.bfloat16)
    gamma_2d = jnp.pad(gamma, (0, h_pad - n_hidden)).reshape(1, h_pad).astype(jnp.float32)
    beta_2d = jnp.pad(beta, (0, h_pad - n_hidden)).reshape(1, h_pad).astype(jnp.float32)
    w2_bf = jnp.pad(w2, ((0, h_pad - n_hidden), (0, o_pad - out_dim))).astype(jnp.bfloat16)
    b2_2d = jnp.pad(b2, (0, o_pad - out_dim)).reshape(1, o_pad).astype(jnp.float32)

    params = tuple(jax.device_put(p) for p in (w1_bf, gamma_2d, beta_2d, w2_bf, b2_2d))
    return params, out_dim


@functools.partial(jax.jit, static_argnames=("out_dim",))
def mlp_forward(x, params, out_dim):
    """Hot path: fused Pallas kernel + in-jit slice back to out_dim."""
    w1_bf, gamma_2d, beta_2d, w2_bf, b2_2d = params
    B, in_dim = x.shape
    h_pad = w1_bf.shape[1]
    o_pad = w2_bf.shape[1]

    full = lambda shape: pl.BlockSpec(shape, lambda: (0,) * len(shape))

    cost = pl.CostEstimate(
        flops=2 * B * (in_dim * h_pad + h_pad * o_pad) + 6 * B * h_pad,
        transcendentals=h_pad,  # rsqrt per (padded) hidden feature
        bytes_accessed=(x.size * 4 + w1_bf.size * 2 + 2 * h_pad * 4
                        + w2_bf.size * 2 + o_pad * 4 + B * o_pad * 4),
    )

    out_full = pl.pallas_call(
        mlp_kernel,
        out_shape=jax.ShapeDtypeStruct((B, o_pad), jnp.float32),
        in_specs=[
            full((B, in_dim)),
            full((in_dim, h_pad)),
            full((1, h_pad)),
            full((1, h_pad)),
            full((h_pad, o_pad)),
            full((1, o_pad)),
        ],
        out_specs=full((B, o_pad)),
        cost_estimate=cost,
        compiler_params=pltpu.CompilerParams(vmem_limit_bytes=32 * 1024 * 1024),
    )(x, w1_bf, gamma_2d, beta_2d, w2_bf, b2_2d)

    # Strip the lane padding; fused under the same jit (no extra HBM copy).
    return out_full[:, :out_dim]


if __name__ == "__main__":
    # Small shapes consistent with the module: MLP(in_dim=16, n_hidden=32, out_dim=10)
    B, IN_DIM, N_HIDDEN, OUT_DIM = 8, 16, 32, 10

    key = jax.random.PRNGKey(0)
    kx, kw1, kb1, kw2, kb2 = jax.random.split(key, 5)

    x = jax.random.normal(kx, (B, IN_DIM), dtype=jnp.float32)

    # Deterministic parameter init (synthetic; mimics torch Linear uniform bounds).
    lim1 = 1.0 / jnp.sqrt(IN_DIM)
    w1 = jax.random.uniform(kw1, (IN_DIM, N_HIDDEN), jnp.float32, -lim1, lim1)
    b1 = jax.random.uniform(kb1, (N_HIDDEN,), jnp.float32, -lim1, lim1)

    # BatchNorm1d affine params at their torch defaults.
    gamma = jnp.ones((N_HIDDEN,), jnp.float32)
    beta = jnp.zeros((N_HIDDEN,), jnp.float32)

    lim2 = 1.0 / jnp.sqrt(N_HIDDEN)
    w2 = jax.random.uniform(kw2, (N_HIDDEN, OUT_DIM), jnp.float32, -lim2, lim2)
    b2 = jax.random.uniform(kb2, (OUT_DIM,), jnp.float32, -lim2, lim2)

    # One-time prep (pad + cast) off the hot path.
    params, out_dim = prepare_params(w1, b1, gamma, beta, w2, b2)

    out = mlp_forward(x, params, out_dim)
    jax.block_until_ready(out)
    assert out.shape == (B, OUT_DIM)

    # Pure-f32 reference of the original module's math, INCLUDING b1 (the
    # kernel drops b1, which train-mode BN cancels exactly, so they must match).
    h = x @ w1 + b1
    mean = h.mean(axis=0, keepdims=True)
    var = ((h - mean) ** 2).mean(axis=0, keepdims=True)
    ref = jnp.maximum(gamma * (h - mean) / jnp.sqrt(var + BN_EPS) + beta, 0.0) @ w2 + b2

    # Tolerance sized for bf16 MXU operands with f32 accumulation.
    assert jnp.allclose(out, ref, atol=2e-2, rtol=2e-2), "mismatch vs reference"

    print("KERNEL_OK")
</pallas_src>

<mosaic_0001>
module attributes {stable_mosaic.version = 11 : i64} {
  func.func @mlp_kernel(%arg0: memref<8x16xf32, #tpu.memory_space<vmem>>, %arg1: memref<16x128xbf16, #tpu.memory_space<vmem>>, %arg2: memref<1x128xf32, #tpu.memory_space<vmem>>, %arg3: memref<1x128xf32, #tpu.memory_space<vmem>>, %arg4: memref<128x128xbf16, #tpu.memory_space<vmem>>, %arg5: memref<1x128xf32, #tpu.memory_space<vmem>>, %arg6: memref<8x128xf32, #tpu.memory_space<vmem>>) attributes {dimension_semantics = [], scalar_prefetch = 0 : i64, scratch_operands = 0 : i64, tpu.core_type = #tpu.core_type<tc>} {
    %c0 = arith.constant 0 : index
    %c0_0 = arith.constant 0 : index
    %0 = vector.load %arg0[%c0, %c0_0] : memref<8x16xf32, #tpu.memory_space<vmem>>, vector<8x16xf32>
    %1 = arith.truncf %0 : vector<8x16xf32> to vector<8x16xbf16>
    %c0_1 = arith.constant 0 : index
    %c0_2 = arith.constant 0 : index
    %2 = vector.load %arg1[%c0_1, %c0_2] : memref<16x128xbf16, #tpu.memory_space<vmem>>, vector<16x128xbf16>
    %cst = arith.constant dense<0.000000e+00> : vector<8x128xf32>
    %3 = tpu.matmul %1, %2, %cst {dimension_numbers = #tpu.dot_dimension_numbers<[1], [0], [0], [1], [0, 0, 1, 1], [], []>} : vector<8x16xbf16>, vector<16x128xbf16>, vector<8x128xf32> -> vector<8x128xf32>
    %cst_3 = arith.constant dense<0.000000e+00> : vector<128xf32>
    %4 = vector.multi_reduction <add>, %3, %cst_3 [0] : vector<8x128xf32> to vector<128xf32>
    %5 = vector.shape_cast %4 : vector<128xf32> to vector<1x128xf32>
    %cst_4 = arith.constant 8.000000e+00 : f32
    %6 = vector.broadcast %cst_4 : f32 to vector<1x128xf32>
    %7 = arith.divf %5, %6 : vector<1x128xf32>
    %8 = vector.broadcast %7 : vector<1x128xf32> to vector<8x128xf32>
    %9 = arith.subf %3, %8 : vector<8x128xf32>
    %10 = arith.mulf %9, %9 : vector<8x128xf32>
    %cst_5 = arith.constant dense<0.000000e+00> : vector<128xf32>
    %11 = vector.multi_reduction <add>, %10, %cst_5 [0] : vector<8x128xf32> to vector<128xf32>
    %12 = vector.shape_cast %11 : vector<128xf32> to vector<1x128xf32>
    %cst_6 = arith.constant 8.000000e+00 : f32
    %13 = vector.broadcast %cst_6 : f32 to vector<1x128xf32>
    %14 = arith.divf %12, %13 : vector<1x128xf32>
    %c0_7 = arith.constant 0 : index
    %c0_8 = arith.constant 0 : index
    %15 = vector.load %arg2[%c0_7, %c0_8] : memref<1x128xf32, #tpu.memory_space<vmem>>, vector<1x128xf32>
    %cst_9 = arith.constant 9.99999974E-6 : f32
    %16 = vector.broadcast %cst_9 : f32 to vector<1x128xf32>
    %17 = arith.addf %14, %16 : vector<1x128xf32>
    %18 = math.rsqrt %17 : vector<1x128xf32>
    %19 = arith.mulf %15, %18 : vector<1x128xf32>
    %20 = vector.broadcast %19 : vector<1x128xf32> to vector<8x128xf32>
    %21 = arith.mulf %9, %20 : vector<8x128xf32>
    %c0_10 = arith.constant 0 : index
    %c0_11 = arith.constant 0 : index
    %22 = vector.load %arg3[%c0_10, %c0_11] : memref<1x128xf32, #tpu.memory_space<vmem>>, vector<1x128xf32>
    %23 = vector.broadcast %22 : vector<1x128xf32> to vector<8x128xf32>
    %24 = arith.addf %21, %23 : vector<8x128xf32>
    %cst_12 = arith.constant 0.000000e+00 : f32
    %25 = vector.broadcast %cst_12 : f32 to vector<8x128xf32>
    %26 = arith.maximumf %24, %25 : vector<8x128xf32>
    %27 = arith.truncf %26 : vector<8x128xf32> to vector<8x128xbf16>
    %c0_13 = arith.constant 0 : index
    %c0_14 = arith.constant 0 : index
    %28 = vector.load %arg4[%c0_13, %c0_14] : memref<128x128xbf16, #tpu.memory_space<vmem>>, vector<128x128xbf16>
    %cst_15 = arith.constant dense<0.000000e+00> : vector<8x128xf32>
    %29 = tpu.matmul %27, %28, %cst_15 {dimension_numbers = #tpu.dot_dimension_numbers<[1], [0], [0], [1], [0, 0, 1, 1], [], []>} : vector<8x128xbf16>, vector<128x128xbf16>, vector<8x128xf32> -> vector<8x128xf32>
    %c0_16 = arith.constant 0 : index
    %c0_17 = arith.constant 0 : index
    %30 = vector.load %arg5[%c0_16, %c0_17] : memref<1x128xf32, #tpu.memory_space<vmem>>, vector<1x128xf32>
    %31 = vector.broadcast %30 : vector<1x128xf32> to vector<8x128xf32>
    %32 = arith.addf %29, %31 : vector<8x128xf32>
    %c0_18 = arith.constant 0 : index
    %c0_19 = arith.constant 0 : index
    %33 = vector.load %arg6[%c0_18, %c0_19] : memref<8x128xf32, #tpu.memory_space<vmem>>, vector<8x128xf32>
    tpu.vector_store %arg6[%c0_18, %c0_19], %32 {strides = array<i32>} : memref<8x128xf32, #tpu.memory_space<vmem>>, vector<8x128xf32>,
    return
  }
}

</mosaic_0001>

<bundles_post_ra>
// kernel: mlp_forward.1
= control target key start
LH: loop header
LB: loop body
LE: loop exit
PB: predicated region body
PF: predicated region fallthrough
CT: control target
= control target key end

     0   :  { %11 = vsyncpa [#allocation3], 0  ;;  %s552_s0 = inlined_call_operand.hbm [shape: f32[8,16], index: 0, kind: input, shape index: {}]   ;;  %s553_s1 = inlined_call_operand.hbm [shape: bf16[16,128], index: 1, kind: input, shape index: {}]   ;;  %s554_s2 = inlined_call_operand.vmem [shape: f32[1,128], index: 2, kind: input, shape index: {}]   ;;  %s555_s3 = inlined_call_operand.vmem [shape: f32[1,128], index: 3, kind: input, shape index: {}]   ;;  %s556_s4 = inlined_call_operand.hbm [shape: bf16[128,128], index: 4, kind: input, shape index: {}]   ;;  %s557_s5 = inlined_call_operand.vmem [shape: f32[1,128], index: 5, kind: input, shape index: {}]   ;;  %s558_s6 = inlined_call_operand.hbm [shape: f32[8,128], index: 6, kind: output, shape index: {}]  }
   0x1   :  { %12 = vsyncpa [#allocation6], 0 }
   0x2   :  { %13 = vsyncpa [#allocation4], 0  ;;  %s446_s21 = smov [#allocation5]   ;;  %s352_s25 = scalar_lea.hbm %s553_s1, 128 }
   0x3   :  { %s29_s22 = sshll.u32 %s446_s21, 4  ;;  %p353_p0 = scmp.ne.s32.totalorder %s553_s1, %s352_s25  ;;  %s30_s22 = int_to_ptr.vmem [resolvable:$true] %s29_s22 }
   0x4   :  { %p356_p1 = scmp.lt.u32.totalorder %s352_s25, %s553_s1 }
   0x6   :  { %p358_p2 = pnand %p356_p1, %p353_p0 }
   0x8   :  { %361 = shalt.err (!%p358_p2)
}
   0x9   :  { %s362_s30 = scalar_lea.vmem %s30_s22, 128  ;;  %p367_p4 = scmp.lt.s32.totalorder %s30_s22, %s30_s22 }
   0xa   :  { %p363_p3 = scmp.ne.s32.totalorder %s30_s22, %s362_s30  ;;  %p368_p5 = scmp.lt.s32.totalorder %s362_s30, %s362_s30 }
   0xc   :  { %p369_p6 = por %p368_p5, %p367_p4 }
   0xe   :  { %p370_p7 = pnand %p369_p6, %p363_p3 }
  0x10   :  { %373 = shalt.err (!%p370_p7)
}
  0x11   :  { %s447_s7 = smov 64   ;;  %s448_s8 = smov 4  }
  0x12   :  { %35 = dma.hbm_to_vmem [thread:$0]  %s553_s1, 128, %s30_s22, [#allocation6], %s447_s7, %s447_s7, %s448_s8  }
  0x13   :  { %s449_s11 = smov [#allocation2]   ;;  %s450_s13 = smov [#allocation7]  }
  0x14   :  { %s20_s12 = sshll.u32 %s449_s11, 4  ;;  %s45_s14 = sshll.u32 %s450_s13, 4  ;;  %s21_s12 = int_to_ptr.vmem [resolvable:$true] %s20_s12  ;;  %s46_s14 = int_to_ptr.vmem [resolvable:$true] %s45_s14 }
  0x15   :  { %s374_s17 = scalar_lea.hbm %s552_s0, 128 }
  0x16   :  { %p375_p8 = scmp.ne.s32.totalorder %s552_s0, %s374_s17  ;;  %p378_p9 = scmp.lt.u32.totalorder %s374_s17, %s552_s0 }
  0x18   :  { %p380_p10 = pnand %p378_p9, %p375_p8 }
  0x1a   :  { %383 = shalt.err (!%p380_p10)
}
  0x1b   :  { %s384_s1 = scalar_lea.vmem %s21_s12, 128  ;;  %p389_p12 = scmp.lt.s32.totalorder %s21_s12, %s21_s12 }
  0x1c   :  { %p385_p11 = scmp.ne.s32.totalorder %s21_s12, %s384_s1  ;;  %p390_p13 = scmp.lt.s32.totalorder %s384_s1, %s384_s1 }
  0x1e   :  { %p391_p0 = por %p390_p13, %p389_p12 }
  0x20   :  { %p392_p1 = pnand %p391_p0, %p385_p11 }
  0x22   :  { %395 = shalt.err (!%p392_p1)
}
  0x23   :  { %23 = dma.hbm_to_vmem [thread:$0]  %s552_s0, 128, %s21_s12, [#allocation3]  }
  0x24   :  { %s396_s26 = scalar_lea.hbm %s556_s4, 1024 }
  0x25   :  { %p397_p2 = scmp.ne.s32.totalorder %s556_s4, %s396_s26  ;;  %p400_p3 = scmp.lt.u32.totalorder %s396_s26, %s556_s4 }
  0x27   :  { %p402_p4 = pnand %p400_p3, %p397_p2 }
  0x29   :  { %405 = shalt.err (!%p402_p4)
}
  0x2a   :  { %s406_s9 = scalar_lea.vmem %s46_s14, 1024  ;;  %p411_p6 = scmp.lt.s32.totalorder %s46_s14, %s46_s14 }
  0x2b   :  { %p407_p5 = scmp.ne.s32.totalorder %s46_s14, %s406_s9  ;;  %p412_p7 = scmp.lt.s32.totalorder %s406_s9, %s406_s9 }
  0x2d   :  { %p413_p8 = por %p412_p7, %p411_p6 }
  0x2f   :  { %p414_p9 = pnand %p413_p8, %p407_p5 }
  0x31   :  { %417 = shalt.err (!%p414_p9)
}
  0x32   :  { %51 = dma.hbm_to_vmem [thread:$0]  %s556_s4, 1024, %s46_s14, [#allocation6], %s447_s7, %s447_s7, %s448_s8  }
  0x33   :  { %440 = dma.done.wait [#allocation3], 128  }
  0x34   :  { %441 = vsyncadd [#allocation3], 4294967168 }
  0x35   :  { %442 = dma.done.wait [#allocation6], 1152  }
  0x36   :  { %443 = vsyncadd [#allocation6], 4294966144  ;;  %v451_v0 = vmov 0.0   ;;  %vm452_vm0 = vmmov 0   ;;  %v341_v1 = vld [vmem:[#allocation5] sm:$0xff]   ;;  %v64_v2 = vld [vmem:[#allocation2] sm:$0xff]  ;;  %v140_v33 = vlaneseq }
  0x37   :  { %307 = vmatprep.subr.bf16.mxu0 %v451_v0  ;;  %309 = vmatprep.mubr.msk.bf16.mxu0 %vm452_vm0, %v451_v0  ;;  %vm74_vm1 = vcmask 130048   ;;  %v65_v3 = vpack.c.bf16 %v64_v2, %v64_v2  ;;  %v342_v4 = vld [vmem:[#allocation7] sm:$0xff]   ;;  %v343_v5 = vld [vmem:[#allocation7 + $0x8] sm:$0xff]   ;;  %v344_v6 = vld [vmem:[#allocation7 + $0x10] sm:$0xff]   ;;  %s453_s14 = smov [#allocation8]  }
  0x38   :  { %313 = vmatprep.subr.bf16.mxu1 %v451_v0  ;;  %329 = vmatprep.mubr.msk.bf16.mxu1 %vm452_vm0, %v451_v0  ;;  %v345_v7 = vld [vmem:[#allocation7 + $0x18] sm:$0xff]   ;;  %v346_v8 = vld [vmem:[#allocation7 + $0x20] sm:$0xff]   ;;  %v347_v9 = vld [vmem:[#allocation7 + $0x28] sm:$0xff]   ;;  %v141_v34 = vshrl.u32 %v140_v33, 7  ;;  %s274_s15 = sshll.u32 %s453_s14, 4  ;;  %s275_s15 = int_to_ptr.vmem [resolvable:$true] %s274_s15 }
  0x39   :  { %308 = vmatpush3.bf16.msra.mxu0 %v341_v1  ;;  %314 = vmatpush3.bf16.msra.mxu1 %v342_v4  ;;  %v348_v10 = vld [vmem:[#allocation7 + $0x30] sm:$0xff]   ;;  %v349_v11 = vld [vmem:[#allocation7 + $0x38] sm:$0xff]   ;;  %p423_p11 = scmp.lt.s32.totalorder %s275_s15, %s275_s15 }
  0x3a   :  { %315 = vmatprep.subr.bf16.mxu1 %v451_v0  ;;  %v135_v35 = vld [vmem:[%s554_s2] sm:$0x1]  ;;  %v142_v36 = vsub.s32 0, %v141_v34  ;;  %s418_s2 = scalar_lea.vmem %s275_s15, 128 }
  0x3b   :  { %v286_v40 = vld [vmem:[%s555_s3] ss:$0 sm:$0xff]  ;;  %p419_p10 = scmp.ne.s32.totalorder %s275_s15, %s418_s2  ;;  %p424_p12 = scmp.lt.s32.totalorder %s418_s2, %s418_s2 }
  0x3c   :  { %310 = vmatmul.mubr.msk.bf16.vlgmr.msra.gmra.mrb[0].mxu0 %vm74_vm1, %v65_v3  ;;  %v287_v45 = vld [vmem:[%s557_s5] ss:$0 sm:$0xff] }
  0x3d   :  { %316 = vmatpush3.bf16.msra.mxu1 %v343_v5  ;;  %p425_p13 = por %p424_p12, %p423_p11 }
  0x3e   :  { %317 = vmatprep.subr.bf16.mxu1 %v451_v0 }
  0x3f   :  { %p426_p0 = pnand %p425_p13, %p419_p10 }
  0x41   :  { %318 = vmatpush3.bf16.msra.mxu1 %v344_v6 }
  0x42   :  { %319 = vmatprep.subr.bf16.mxu1 %v451_v0 }
  0x45   :  { %320 = vmatpush3.bf16.msra.mxu1 %v345_v7 }
  0x46   :  { %321 = vmatprep.subr.bf16.mxu1 %v451_v0 }
  0x49   :  { %322 = vmatpush3.bf16.msra.mxu1 %v346_v8 }
  0x4a   :  { %323 = vmatprep.subr.bf16.mxu1 %v451_v0 }
  0x4d   :  { %324 = vmatpush3.bf16.msra.mxu1 %v347_v9 }
  0x4e   :  { %325 = vmatprep.subr.bf16.mxu1 %v451_v0 }
  0x51   :  { %326 = vmatpush3.bf16.msra.mxu1 %v348_v10 }
  0x52   :  { %327 = vmatprep.subr.bf16.mxu1 %v451_v0 }
  0x55   :  { %328 = vmatpush3.bf16.msra.mxu1 %v349_v11 }
 0x10f   :  { %v112_v12 = vpop.f32.mrb[0].mxu0 }
 0x110   :  { %v118_v13 = vrot.slane %v112_v12, 4  ;;  %v311_v14 = vpop.f32.mrb[1].mxu0 }
 0x111   :  { %v115_v15 = vpop.f32.mrb[2].mxu0 }
 0x112   :  { %v119_v16 = vadd.f32 %v118_v13, %v112_v12  ;;  %v312_v17 = vpop.f32.mrb[3].mxu0 }
 0x114   :  { %v120_v18 = vrot.slane %v119_v16, 2 }
 0x116   :  { %v121_v19 = vadd.f32 %v120_v18, %v119_v16 }
 0x118   :  { %v122_v20 = vrot.slane %v121_v19, 1 }
 0x11a   :  { %v123_v21 = vadd.f32 %v122_v20, %v121_v19 }
 0x11c   :  { %v125_v22 = vmul.f32 0.125, %v123_v21 }
 0x11e   :  { %v126_v23 = vsub.f32 %v112_v12, %v125_v22 }
 0x120   :  { %v127_v24 = vmul.f32 %v126_v23, %v126_v23 }
 0x122   :  { %v128_v25 = vrot.slane %v127_v24, 4 }
 0x124   :  { %v129_v26 = vadd.f32 %v128_v25, %v127_v24 }
 0x126   :  { %v130_v27 = vrot.slane %v129_v26, 2 }
 0x128   :  { %v131_v28 = vadd.f32 %v130_v27, %v129_v26 }
 0x12a   :  { %v132_v29 = vrot.slane %v131_v28, 1 }
 0x12c   :  { %v133_v30 = vadd.f32 %v132_v29, %v131_v28 }
 0x12e   :  { %v134_v31 = vmul.f32 0.125, %v133_v30 }
 0x130   :  { %v136_v32 = vadd.f32 1e-05, %v134_v31 }
 0x132   :  { %350 = vrsqrt.f32 %v136_v32 }
 0x13c   :  { %v351_v37 = vpop.eup %350 }
 0x13d   :  { %v138_v38 = vmul.f32 %v351_v37, %v135_v35 }
 0x13f   :  { %v143_v39 = vrot.slane %v138_v38, %v142_v36 }
 0x141   :  { %v145_v41 = vmul.f32 %v143_v39, %v126_v23 }
 0x143   :  { %v153_v42 = vadd.f32 %v286_v40, %v145_v41 }
 0x145   :  { %v154_v43 = vmax.f32 %v153_v42, 0.0 }
 0x147   :  { %v155_v44 = vpack.c.bf16 %v154_v43, %v154_v43 }
 0x149   :  { %330 = vmatmul.mubr.bf16.vlgmr.msra.gmra.mrb[0].mxu1 %v155_v44 }
 0x21c   :  { %v261_v46 = vpop.f32.mrb[0].mxu1 }
 0x21d   :  { %v262_v47 = vadd.f32 %v287_v45, %v261_v46  ;;  %v331_v48 = vpop.f32.mrb[1].mxu1 }
 0x21e   :  { %v264_v49 = vpop.f32.mrb[2].mxu1 }
 0x21f   :  { %267 = vst [vmem:[#allocation8] sm:$0xff] %v262_v47  ;;  %v332_v50 = vpop.f32.mrb[3].mxu1 }
 0x220   :  { %429 = shalt.err (!%p426_p0)
}
 0x221   :  { %s430_s5 = scalar_lea.hbm %s558_s6, 128 }
 0x222   :  { %p431_p1 = scmp.ne.s32.totalorder %s558_s6, %s430_s5  ;;  %p434_p2 = scmp.lt.u32.totalorder %s430_s5, %s558_s6 }
 0x224   :  { %p436_p3 = pnand %p434_p2, %p431_p1 }
 0x226   :  { %439 = shalt.err (!%p436_p3)
}
 0x227   :  { %277 = dma.vmem_to_hbm [thread:$0]  %s275_s15, 128, %s558_s6, [#allocation4]  }
 0x228   :  { %444 = dma.done.wait [#allocation4], 128  }
 0x229   :  { %445 = vsyncadd [#allocation4], 4294967168 }
 0x22a   :  { %281 = vsyncpa [#allocation3], 1 }
 0x22b   :  { %282 = vsyncpa [#allocation6], 1 }
 0x22c   :  { %283 = vsyncpa [#allocation4], 1 }

</bundles_post_ra>
